<compile_context>
chip_gen: v7x
topology: tpu7x:2x2x1
jax: 0.10.0
libtpu: 0.0.40
codegen_flags: <defaults>
</compile_context>

<pallas_src>
import jax
import jax.numpy as jnp
from jax.experimental import pallas as pl
from jax.experimental.pallas import tpu as pltpu

# ----------------------------- configuration --------------------------------
B = 2            # batch
C = 4            # target / noise channels
CC = 4           # image context channels
H = W = 16       # spatial
HD = 32          # hidden width (CNP + backbone)
NUM_CLASSES = 10
NUM_TIMESTEPS = 1000
STD_MULT = 1.0   # self.std_mult (== initial_std_mult at init)
STD_EPS = 1e-3

HW = H * W                      # 256 tokens per batch / per grid program
N_TOK = B * HW                  # 512 tokens total (lane axis)
CIN = C + CC + C + C            # backbone input channels [noisy_x|image_ctx|mean|std]
ACT_ROWS = CC + 2 * C           # packed activations: [image_ctx | trg | noise] = 12
COND_ROWS = HD + 2              # per-batch conditioning: [bias1b | sqrt(ab) | sqrt(1-ab)]


# ---- packed weight-slab layout (row offsets padded to multiples of 8) -------
def _r8(n):
    return ((n + 7) // 8) * 8


SLAB_COLS = HD                              # widest weight is HD = 32 lanes
R_W1M = 0                                   # [2*HD, CC]  merged CNP-L1 + backbone image_ctx slice
R_B1C = R_W1M + _r8(2 * HD)                 # [HD, 1]
R_W2C = R_B1C + _r8(HD)                     # [2C, HD]
R_B2C = R_W2C + _r8(2 * C)                  # [2C, 1]
R_W1BIN = R_B2C + _r8(2 * C)                # [HD, 3C]    backbone L1 on [noisy_x|mean|std]
R_W2B = R_W1BIN + _r8(HD)                   # [C, HD]
R_B2B = R_W2B + _r8(C)                      # [C, 1]
SLAB_ROWS = R_B2B + _r8(C)                  # 160 rows x 32 lanes x f32 = 20 KB


# ------------------------------- kernel -------------------------------------
def _cdnp_kernel(acts_ref, cond_ref, slab_ref, out_ref):
    # ---- this batch's 256 tokens: channels on sublanes, tokens on lanes ----
    xctx = acts_ref[0:CC, :]                     # [CC, HW]
    trg = acts_ref[CC:CC + C, :]                 # [C,  HW]
    noise = acts_ref[CC + C:CC + 2 * C, :]       # [C,  HW]

    # ---- compact per-batch conditioning (broadcast over lanes in-kernel) ----
    cond = cond_ref[0]                           # [HD+2, 1]
    bias1b = cond[:HD, :]                        # [HD, 1]  (b1b + temb + lemb)
    sqrt_ab = cond[HD:HD + 1, :]                 # [1, 1]
    sqrt_1mab = cond[HD + 1:HD + 2, :]           # [1, 1]

    # ---- static (free) slices of the packed weight slab ----
    w1m = slab_ref[R_W1M:R_W1M + 2 * HD, 0:CC]           # [2HD, CC]
    b1c = slab_ref[R_B1C:R_B1C + HD, 0:1]                # [HD, 1]
    w2c = slab_ref[R_W2C:R_W2C + 2 * C, 0:HD]            # [2C, HD]
    b2c = slab_ref[R_B2C:R_B2C + 2 * C, 0:1]             # [2C, 1]
    w1bin = slab_ref[R_W1BIN:R_W1BIN + HD, 0:3 * C]      # [HD, 3C]
    w2b = slab_ref[R_W2B:R_W2B + C, 0:HD]                # [C, HD]
    b2b = slab_ref[R_B2B:R_B2B + C, 0:1]                 # [C, 1]

    # ---- merged first matmul: CNP layer-1 and backbone image_ctx slice share xctx
    pre = jnp.dot(w1m, xctx, preferred_element_type=jnp.float32)      # [2HD, HW]
    h = jnp.maximum(pre[:HD, :] + b1c, 0.0)                           # CNP hidden [HD, HW]
    hb_ctx = pre[HD:, :] + bias1b                # retire conditioning bias early

    # ---- CNP layer 2 -> per-pixel mean / std (softplus only on std rows) ----
    stats = jnp.dot(w2c, h, preferred_element_type=jnp.float32) + b2c  # [2C, HW]
    mean = stats[:C, :]                                                # [C, HW]
    std = (jax.nn.softplus(stats[C:, :]) + STD_EPS) * STD_MULT         # [C, HW]
    inv_std = pl.reciprocal(std, approx=True)

    # ---- trg_tilde = (trg - mean)/std ; DDPM add_noise with per-batch scalars ----
    trg_tilde = (trg - mean) * inv_std
    noisy_x = sqrt_ab * trg_tilde + sqrt_1mab * noise                  # [C, HW]

    # ---- backbone: one merged K=12 matmul over [noisy_x|mean|std]; ctx part is hb_ctx
    xin = jnp.concatenate([noisy_x, mean, std], axis=0)                # [3C, HW]
    hb = jnp.maximum(
        jnp.dot(w1bin, xin, preferred_element_type=jnp.float32) + hb_ctx, 0.0)
    pred_noise = jnp.dot(w2b, hb, preferred_element_type=jnp.float32) + b2b  # [C, HW]

    # ---- lane-dense per-token squared error (final mean taken in the wrapper) ----
    d = pred_noise - noise
    out_ref[...] = jnp.sum(d * d, axis=0, keepdims=True)               # [1, HW]


def cdnp_forward_loss(acts, cond, slab):
    sse_tok = pl.pallas_call(
        _cdnp_kernel,
        out_shape=jax.ShapeDtypeStruct((1, N_TOK), jnp.float32),
        grid=(B,),
        in_specs=[
            pl.BlockSpec((ACT_ROWS, HW), lambda b: (0, b)),        # this batch's tokens
            pl.BlockSpec((1, COND_ROWS, 1), lambda b: (b, 0, 0)),  # this batch's conditioning
            pl.BlockSpec((SLAB_ROWS, SLAB_COLS), lambda b: (0, 0)),  # weights, DMA'd once
        ],
        out_specs=pl.BlockSpec((1, HW), lambda b: (0, b)),
        compiler_params=pltpu.CompilerParams(
            dimension_semantics=("parallel",)),
    )(acts, cond, slab)
    # mse_loss(reduction='mean') over all elements of pred_noise / noise
    return jnp.sum(sse_tok) / float(N_TOK * C)


# ------------------------------- glue ----------------------------------------
def _sinusoidal_embedding(t, dim):
    half = dim // 2
    freqs = jnp.exp(-jnp.log(10000.0) * jnp.arange(half, dtype=jnp.float32) / half)
    args = t.astype(jnp.float32)[:, None] * freqs[None, :]
    return jnp.concatenate([jnp.sin(args), jnp.cos(args)], axis=-1)   # [B, dim]


def _nchw_to_cmajor(x):
    # NCHW -> [C, B*H*W]  (channels on sublanes, tokens on lanes; token = b*HW + spatial)
    b, c, h, w = x.shape
    return jnp.transpose(x.reshape(b, c, h * w), (1, 0, 2)).reshape(c, b * h * w)


def make_params(key):
    ks = jax.random.split(key, 8)
    s = lambda k, shp, fan: jax.random.normal(k, shp, jnp.float32) / jnp.sqrt(fan)
    return {
        "w1c": s(ks[0], (CC, HD), CC), "b1c": jnp.zeros((1, HD), jnp.float32),
        "w2c": s(ks[1], (HD, 2 * C), HD), "b2c": jnp.zeros((1, 2 * C), jnp.float32),
        "w1b": s(ks[2], (CIN, HD), CIN), "b1b": jnp.zeros((1, HD), jnp.float32),
        "w2b": s(ks[3], (HD, C), HD), "b2b": jnp.zeros((1, C), jnp.float32),
        "lemb_table": s(ks[4], (NUM_CLASSES, HD), HD),
    }


def make_weight_slab(p):
    """Pack every (transposed, token-on-lane) weight/bias into one f32 slab."""
    w1b = p["w1b"]  # [CIN, HD]; input rows: [noisy_x(0:4) | image_ctx(4:8) | mean(8:12) | std(12:16)]
    slab = jnp.zeros((SLAB_ROWS, SLAB_COLS), jnp.float32)

    def put(s, r, a):
        return s.at[r:r + a.shape[0], :a.shape[1]].set(a)

    # merged first matmul: CNP layer-1 weight stacked over backbone image_ctx slice
    slab = put(slab, R_W1M, jnp.concatenate([p["w1c"].T, w1b[C:C + CC, :].T], axis=0))  # [2HD, CC]
    slab = put(slab, R_B1C, p["b1c"].T)                                                  # [HD, 1]
    slab = put(slab, R_W2C, p["w2c"].T)                                                  # [2C, HD]
    slab = put(slab, R_B2C, p["b2c"].T)                                                  # [2C, 1]
    # merged backbone L1 weight over [noisy_x | mean | std]
    slab = put(slab, R_W1BIN, jnp.concatenate(
        [w1b[:C, :].T, w1b[C + CC:C + CC + C, :].T, w1b[C + CC + C:, :].T], axis=1))     # [HD, 3C]
    slab = put(slab, R_W2B, p["w2b"].T)                                                  # [C, HD]
    slab = put(slab, R_B2B, p["b2b"].T)                                                  # [C, 1]
    return slab


if __name__ == "__main__":
    root = jax.random.PRNGKey(0)
    k_par, k_ctx, k_trg, k_lab, k_t, k_noise = jax.random.split(root, 6)

    params = make_params(k_par)
    slab = make_weight_slab(params)

    # inputs (PyTorch NCHW convention)
    image_ctx = jax.random.normal(k_ctx, (B, CC, H, W), jnp.float32)   # ctx.image_ctx
    trg = jax.random.normal(k_trg, (B, C, H, W), jnp.float32)          # trg
    labels = jax.random.randint(k_lab, (B,), 0, NUM_CLASSES)           # ctx.label_ctx

    # timesteps = randint(0, num_train_timesteps - 1, (B,))
    timesteps = jax.random.randint(k_t, (B,), 0, NUM_TIMESTEPS - 1)

    # noise = randn_like(trg_tilde)
    noise = jax.random.normal(k_noise, (B, C, H, W), jnp.float32)

    # DDPMScheduler (linear betas) add_noise coefficients
    betas = jnp.linspace(1e-4, 0.02, NUM_TIMESTEPS, dtype=jnp.float32)
    alphas_cumprod = jnp.cumprod(1.0 - betas)
    ab_t = alphas_cumprod[timesteps]                                   # [B]
    coef = jnp.stack([jnp.sqrt(ab_t), jnp.sqrt(1.0 - ab_t)], axis=-1)  # [B, 2]

    # fold the three additive conditioning terms into one compact per-batch bias
    temb = _sinusoidal_embedding(timesteps, HD)               # [B, HD]
    lemb = params["lemb_table"][labels]                       # [B, HD]
    bias1b = params["b1b"] + temb + lemb                      # [B, HD]

    # packed kernel operands (3 total)
    acts = jnp.concatenate([_nchw_to_cmajor(image_ctx),
                            _nchw_to_cmajor(trg),
                            _nchw_to_cmajor(noise)], axis=0)  # [12, N_TOK]
    cond = jnp.concatenate([bias1b, coef], axis=1)[:, :, None]  # [B, HD+2, 1]

    loss = cdnp_forward_loss(acts, cond, slab)
    loss = jax.block_until_ready(loss)
    assert loss.shape == () and bool(jnp.isfinite(loss))
    print("KERNEL_OK")
</pallas_src>

<mosaic_0001>
module attributes {stable_mosaic.version = 11 : i64} {
  func.func @_cdnp_kernel(%arg0: i32, %arg1: memref<12x256xf32, #tpu.memory_space<vmem>>, %arg2: memref<1x34x1xf32, #tpu.memory_space<vmem>>, %arg3: memref<160x32xf32, #tpu.memory_space<vmem>>, %arg4: memref<1x256xf32, #tpu.memory_space<vmem>>) attributes {dimension_semantics = [#tpu.dimension_semantics<parallel>], iteration_bounds = array<i64: 2>, scalar_prefetch = 0 : i64, scratch_operands = 0 : i64, tpu.core_type = #tpu.core_type<tc>, window_params = [{transform_indices = @transform_0, window_bounds = array<i64: 12, 256>}, {transform_indices = @transform_1, window_bounds = array<i64: 1, 34, 1>}, {pipeline_mode = #tpu.pipeline_mode<synchronous>, transform_indices = @transform_2, window_bounds = array<i64: 160, 32>}, {transform_indices = @transform_3, window_bounds = array<i64: 1, 256>}]} {
    %c0 = arith.constant 0 : index
    %c0_0 = arith.constant 0 : index
    %0 = vector.load %arg1[%c0, %c0_0] : memref<12x256xf32, #tpu.memory_space<vmem>>, vector<4x256xf32>
    %c4 = arith.constant 4 : index
    %c0_1 = arith.constant 0 : index
    %1 = vector.load %arg1[%c4, %c0_1] : memref<12x256xf32, #tpu.memory_space<vmem>>, vector<4x256xf32>
    %c8 = arith.constant 8 : index
    %c0_2 = arith.constant 0 : index
    %2 = vector.load %arg1[%c8, %c0_2] : memref<12x256xf32, #tpu.memory_space<vmem>>, vector<4x256xf32>
    %c0_3 = arith.constant 0 : index
    %c0_4 = arith.constant 0 : index
    %c0_5 = arith.constant 0 : index
    %3 = vector.load %arg2[%c0_3, %c0_4, %c0_5] : memref<1x34x1xf32, #tpu.memory_space<vmem>>, vector<1x34x1xf32>
    %4 = vector.shape_cast %3 : vector<1x34x1xf32> to vector<34x1xf32>
    %5 = vector.extract_strided_slice %4 {offsets = [0, 0], sizes = [32, 1], strides = [1, 1]} : vector<34x1xf32> to vector<32x1xf32>
    %6 = vector.extract_strided_slice %4 {offsets = [32, 0], sizes = [1, 1], strides = [1, 1]} : vector<34x1xf32> to vector<1x1xf32>
    %7 = vector.extract_strided_slice %4 {offsets = [33, 0], sizes = [1, 1], strides = [1, 1]} : vector<34x1xf32> to vector<1x1xf32>
    %c0_6 = arith.constant 0 : index
    %c0_7 = arith.constant 0 : index
    %8 = vector.load %arg3[%c0_6, %c0_7] : memref<160x32xf32, #tpu.memory_space<vmem>>, vector<64x4xf32>
    %c64 = arith.constant 64 : index
    %c0_8 = arith.constant 0 : index
    %9 = vector.load %arg3[%c64, %c0_8] : memref<160x32xf32, #tpu.memory_space<vmem>>, vector<32x1xf32>
    %c96 = arith.constant 96 : index
    %c0_9 = arith.constant 0 : index
    %10 = vector.load %arg3[%c96, %c0_9] : memref<160x32xf32, #tpu.memory_space<vmem>>, vector<8x32xf32>
    %c104 = arith.constant 104 : index
    %c0_10 = arith.constant 0 : index
    %11 = vector.load %arg3[%c104, %c0_10] : memref<160x32xf32, #tpu.memory_space<vmem>>, vector<8x1xf32>
    %c112 = arith.constant 112 : index
    %c0_11 = arith.constant 0 : index
    %12 = vector.load %arg3[%c112, %c0_11] : memref<160x32xf32, #tpu.memory_space<vmem>>, vector<32x12xf32>
    %c144 = arith.constant 144 : index
    %c0_12 = arith.constant 0 : index
    %13 = vector.load %arg3[%c144, %c0_12] : memref<160x32xf32, #tpu.memory_space<vmem>>, vector<4x32xf32>
    %c152 = arith.constant 152 : index
    %c0_13 = arith.constant 0 : index
    %14 = vector.load %arg3[%c152, %c0_13] : memref<160x32xf32, #tpu.memory_space<vmem>>, vector<4x1xf32>
    %cst = arith.constant dense<0.000000e+00> : vector<64x256xf32>
    %15 = tpu.matmul %8, %0, %cst {dimension_numbers = #tpu.dot_dimension_numbers<[1], [0], [0], [1], [0, 0, 1, 1], [], []>} : vector<64x4xf32>, vector<4x256xf32>, vector<64x256xf32> -> vector<64x256xf32>
    %16 = vector.extract_strided_slice %15 {offsets = [0, 0], sizes = [32, 256], strides = [1, 1]} : vector<64x256xf32> to vector<32x256xf32>
    %17 = vector.broadcast %9 : vector<32x1xf32> to vector<32x256xf32>
    %18 = arith.addf %16, %17 : vector<32x256xf32>
    %cst_14 = arith.constant 0.000000e+00 : f32
    %19 = vector.broadcast %cst_14 : f32 to vector<32x256xf32>
    %20 = arith.maximumf %18, %19 : vector<32x256xf32>
    %21 = vector.extract_strided_slice %15 {offsets = [32, 0], sizes = [32, 256], strides = [1, 1]} : vector<64x256xf32> to vector<32x256xf32>
    %22 = vector.broadcast %5 : vector<32x1xf32> to vector<32x256xf32>
    %23 = arith.addf %21, %22 : vector<32x256xf32>
    %cst_15 = arith.constant dense<0.000000e+00> : vector<8x256xf32>
    %24 = tpu.matmul %10, %20, %cst_15 {dimension_numbers = #tpu.dot_dimension_numbers<[1], [0], [0], [1], [0, 0, 1, 1], [], []>} : vector<8x32xf32>, vector<32x256xf32>, vector<8x256xf32> -> vector<8x256xf32>
    %25 = vector.broadcast %11 : vector<8x1xf32> to vector<8x256xf32>
    %26 = arith.addf %24, %25 : vector<8x256xf32>
    %27 = vector.extract_strided_slice %26 {offsets = [0, 0], sizes = [4, 256], strides = [1, 1]} : vector<8x256xf32> to vector<4x256xf32>
    %28 = vector.extract_strided_slice %26 {offsets = [4, 0], sizes = [4, 256], strides = [1, 1]} : vector<8x256xf32> to vector<4x256xf32>
    %cst_16 = arith.constant 0.000000e+00 : f32
    %29 = vector.broadcast %cst_16 : f32 to vector<4x256xf32>
    %30 = arith.maximumf %28, %29 : vector<4x256xf32>
    %31 = vector.broadcast %cst_16 : f32 to vector<4x256xf32>
    %32 = arith.subf %28, %31 : vector<4x256xf32>
    %33 = arith.cmpf one, %32, %32 : vector<4x256xf32>
    %34 = vector.broadcast %cst_16 : f32 to vector<4x256xf32>
    %35 = arith.addf %28, %34 : vector<4x256xf32>
    %36 = math.absf %32 : vector<4x256xf32>
    %cst_17 = arith.constant 0.000000e+00 : f32
    %37 = vector.broadcast %cst_17 : f32 to vector<4x256xf32>
    %38 = arith.subf %37, %36 : vector<4x256xf32>
    %39 = math.exp %38 : vector<4x256xf32>
    %40 = math.log1p %39 : vector<4x256xf32>
    %41 = arith.addf %30, %40 : vector<4x256xf32>
    %42 = arith.select %33, %35, %41 : vector<4x256xi1>, vector<4x256xf32>
    %cst_18 = arith.constant 1.000000e-03 : f32
    %43 = vector.broadcast %cst_18 : f32 to vector<4x256xf32>
    %44 = arith.addf %42, %43 : vector<4x256xf32>
    %cst_19 = arith.constant 1.000000e+00 : f32
    %45 = vector.broadcast %cst_19 : f32 to vector<4x256xf32>
    %46 = arith.mulf %44, %45 : vector<4x256xf32>
    %47 = tpu.reciprocal %46 {approx = true} : vector<4x256xf32> -> vector<4x256xf32>
    %48 = arith.subf %1, %27 : vector<4x256xf32>
    %49 = arith.mulf %48, %47 : vector<4x256xf32>
    %50 = vector.broadcast %6 : vector<1x1xf32> to vector<4x256xf32>
    %51 = arith.mulf %50, %49 : vector<4x256xf32>
    %52 = vector.broadcast %7 : vector<1x1xf32> to vector<4x256xf32>
    %53 = arith.mulf %52, %2 : vector<4x256xf32>
    %54 = arith.addf %51, %53 : vector<4x256xf32>
    %55 = tpu.concatenate %54, %27, %46 in 0 : vector<4x256xf32>, vector<4x256xf32>, vector<4x256xf32> -> vector<12x256xf32>
    %cst_20 = arith.constant dense<0.000000e+00> : vector<32x256xf32>
    %56 = tpu.matmul %12, %55, %cst_20 {dimension_numbers = #tpu.dot_dimension_numbers<[1], [0], [0], [1], [0, 0, 1, 1], [], []>} : vector<32x12xf32>, vector<12x256xf32>, vector<32x256xf32> -> vector<32x256xf32>
    %57 = arith.addf %56, %23 : vector<32x256xf32>
    %cst_21 = arith.constant 0.000000e+00 : f32
    %58 = vector.broadcast %cst_21 : f32 to vector<32x256xf32>
    %59 = arith.maximumf %57, %58 : vector<32x256xf32>
    %cst_22 = arith.constant dense<0.000000e+00> : vector<4x256xf32>
    %60 = tpu.matmul %13, %59, %cst_22 {dimension_numbers = #tpu.dot_dimension_numbers<[1], [0], [0], [1], [0, 0, 1, 1], [], []>} : vector<4x32xf32>, vector<32x256xf32>, vector<4x256xf32> -> vector<4x256xf32>
    %61 = vector.broadcast %14 : vector<4x1xf32> to vector<4x256xf32>
    %62 = arith.addf %60, %61 : vector<4x256xf32>
    %63 = arith.subf %62, %2 : vector<4x256xf32>
    %64 = arith.mulf %63, %63 : vector<4x256xf32>
    %cst_23 = arith.constant dense<0.000000e+00> : vector<256xf32>
    %65 = vector.multi_reduction <add>, %64, %cst_23 [0] : vector<4x256xf32> to vector<256xf32>
    %66 = vector.shape_cast %65 : vector<256xf32> to vector<1x256xf32>
    %c0_24 = arith.constant 0 : index
    %c0_25 = arith.constant 0 : index
    %67 = vector.load %arg4[%c0_24, %c0_25] : memref<1x256xf32, #tpu.memory_space<vmem>>, vector<1x256xf32>
    tpu.vector_store %arg4[%c0_24, %c0_25], %66 {strides = array<i32>} : memref<1x256xf32, #tpu.memory_space<vmem>>, vector<1x256xf32>,
    return
  }
  func.func @transform_0(%arg0: i32) -> (i32, i32) {
    %c0_i32 = arith.constant 0 : i32
    %c0_i32_0 = arith.constant 0 : i32
    return %c0_i32, %arg0 : i32, i32
  }
  func.func @transform_1(%arg0: i32) -> (i32, i32, i32) {
    %c0_i32 = arith.constant 0 : i32
    %c0_i32_0 = arith.constant 0 : i32
    %c0_i32_1 = arith.constant 0 : i32
    return %arg0, %c0_i32, %c0_i32_0 : i32, i32, i32
  }
  func.func @transform_2(%arg0: i32) -> (i32, i32) {
    %c0_i32 = arith.constant 0 : i32
    %c0_i32_0 = arith.constant 0 : i32
    %c0_i32_1 = arith.constant 0 : i32
    return %c0_i32, %c0_i32_0 : i32, i32
  }
  func.func @transform_3(%arg0: i32) -> (i32, i32) {
    %c0_i32 = arith.constant 0 : i32
    %c0_i32_0 = arith.constant 0 : i32
    return %c0_i32, %arg0 : i32, i32
  }
}

</mosaic_0001>

<bundles_post_ra>
// kernel: tpu_custom_call.1
= control target key start
LH: loop header
LB: loop body
LE: loop exit
PB: predicated region body
PF: predicated region fallthrough
CT: control target
= control target key end

     0   :  { %8 = vsyncpa [#allocation4], 0  ;;  %s1442_s0 = inlined_call_operand.vmem [shape: f32[12,512], index: 0, kind: input, shape index: {}]   ;;  %s1443_s1 = inlined_call_operand.vmem [shape: f32[2,34,1], index: 1, kind: input, shape index: {}]   ;;  %s1444_s2 = inlined_call_operand.vmem [shape: f32[160,32], index: 2, kind: input, shape index: {}]   ;;  %s1445_s3 = inlined_call_operand.hbm [shape: f32[1,512], index: 3, kind: output, shape index: {}]  }
   0x1   :  { %10 = vsyncpa [#allocation4 + $0x1], 0  ;;  %s1171_s12 = smov 0   ;;  %s1173_s13 = smov 0  }
   0x2   :  { %s1175_s14 = smov 0   ;;  %s1177_s15 = smov 0  }
   0x3 LB: > { %s1192_s16 = sadd.s32 4294967295, %s1144_s15   ;;  %s945_s17 = sadd.s32 4294967294, %s1144_s15   ;;  %s1144_s15 = sphi %s1177_s15, %s1451_s15   ;;  %s1140_s14 = sphi %s1175_s14, %s1450_s14   ;;  %s1136_s13 = sphi %s1173_s13, %s1449_s13   ;;  %s1132_s12 = sphi %s1171_s12, %s1448_s12  }
   0x4   : > { %s1196_s18 = sadd.s32 1, %s1144_s15   ;;  %s23_s19 = sadd.s32 1, %s1140_s14 }
   0x5   : > { %s20_s20 = ssub.s32 %s1144_s15, %s1196_s18  ;;  %p30_p0 = scmp.ne.s32.totalorder %s1140_s14, %s1136_s13 }
   0x6   : > { %p21_p1 = scmp.eq.s32.totalorder %s20_s20, 0  ;;  %p31_p2 = scmp.eq.s32.totalorder %s1144_s15, 0 }
   0x7   : > { %p107_p3 = scmp.eq.s32.totalorder %s1192_s16, 1  ;;  %p112_p4 = scmp.ne.s32.totalorder %s1136_s13, %s1132_s12 }
   0x8   : > { %s1208_s21 = scalar_select %p21_p1, %s1140_s14, %s23_s19  }
   0x9   : > { %p32_p5 = por %p31_p2, %p30_p0  ;;  %p1210_p6 = por %p107_p3, %p30_p0 }
   0xa   : > { %p113_p7 = scmp.eq.s32.totalorder %s945_s17, 1  ;;  %p947_p9 = scmp.ge.s32.totalorder %s1144_s15, 2 }
   0xc   : > { %p1214_p8 = por %p113_p7, %p112_p4  ;;  %132 = sbr.rel (%p947_p9) target bundleno = 26 (0x1a), region = 20 }
  0x13   : > { %135 = sbr.rel (!%p32_p5) target bundleno = 26 (0x1a), region = 24  ;;  %s137_s24 = sand.u32 (%p32_p5), 1, %s1140_s14  }
  0x14   : > { %s978_s25 = sshll.u32 (%p32_p5), %s1144_s15, 4  ;;  %s948_s26 = sshll.u32 (%p32_p5), %s137_s24, 5 }
  0x15   : > { %s142_s29 = scalar_lea.vmem (%p32_p5), %s1442_s0, %s978_s25  ;;  %s139_s30 = scalar_lea.vmem (%p32_p5), [#allocation2], %s948_s26 }
  0x16   : > { %v155_v0 = vld [vmem:[%s142_s29] sm:$0xff] (%p32_p5)  ;;  %v157_v1 = vld [vmem:[%s142_s29 + $0x8] sm:$0xff] (%p32_p5) }
  0x17   : > { %v159_v2 = vld [vmem:[%s142_s29 + $0x20] sm:$0xff] (%p32_p5)  ;;  %156 = vst [vmem:[%s139_s30] sm:$0xff] (%p32_p5), %v155_v0  ;;  %158 = vst [vmem:[%s139_s30 + $0x8] sm:$0xff] (%p32_p5), %v157_v1  ;;  %v161_v3 = vld [vmem:[%s142_s29 + $0x28] sm:$0xff] (%p32_p5) }
  0x18   : > { %160 = vst [vmem:[%s139_s30 + $0x10] sm:$0xff] (%p32_p5), %v159_v2  ;;  %162 = vst [vmem:[%s139_s30 + $0x18] sm:$0xff] (%p32_p5), %v161_v3 }
  0x1a PF: > { %p951_p10 = scmp.ge.s32.totalorder %s1144_s15, 1  ;;  %p175_p11 = scmp.lt.s32.totalorder %s1144_s15, 3 }
  0x1c   : > { %p176_p12 = pnand %p951_p10, %p175_p11 }
  0x1d   : > { %s1229_s4 = sand.u32 (!%p176_p12), 1, %s1136_s13   ;;  %vm273_vm0 = vcmask (!%p176_p12), 1043456   ;;  %v1146_v4 = vmov (!%p176_p12), 0.0   ;;  %p211_p13 = scmp.lt.s32.totalorder (!%p176_p12), %s1192_s16, 1  ;;  %v228_v5 = vld [vmem:[%s1444_s2] sm:$0xff] (!%p176_p12)  ;;  %vm248_vm1 = vcmask (!%p176_p12), 31744  }
  0x1e   : > { %179 = sbr.rel (%p176_p12) target bundleno = 1036 (0x40c), region = 51  ;;  %s952_s5 = sshll.u32 (!%p176_p12), %s1229_s4, 5  ;;  %344 = vmatprep.mubr.f32.mxu0 (!%p176_p12), %v1146_v4  ;;  %368 = vmatprep.mubr.f32.mxu1 (!%p176_p12), %v1146_v4  ;;  %v1147_v6 = vmov (!%p176_p12), 0   ;;  %v232_v9 = vld [vmem:[%s1444_s2 + $0x20] sm:$0xff] (!%p176_p12)  ;;  %v238_v11 = vld [vmem:[%s1444_s2 + $0x50] sm:$0xff] (!%p176_p12)  ;;  %v229_v12 = vld [vmem:[%s1444_s2 + $0x8] sm:$0xff] (!%p176_p12) }
  0x1f   : > { %1068 = vset.pattern.permute.xlu0 (!%p176_p12), %v1147_v6  ;;  %1069 = vset.pattern.permute.xlu1 (!%p176_p12), %v1147_v6  ;;  %s1238_s8 = scalar_lea.vmem (!%p176_p12), [#allocation2], %s952_s5  ;;  %v236_v10 = vld [vmem:[%s1444_s2 + $0x40] sm:$0xff] (!%p176_p12)  ;;  %v233_v13 = vld [vmem:[%s1444_s2 + $0x28] sm:$0xff] (!%p176_p12)  ;;  %v239_v15 = vld [vmem:[%s1444_s2 + $0x58] sm:$0xff] (!%p176_p12)  ;;  %vm462_vm2 = vcmask (!%p176_p12), 261120   ;;  %vm1148_vm7 = vmmov (!%p176_p12), 1  }
  0x20   : > { %v218_v7 = vld [vmem:[%s1238_s8 + $0x8] sm:$0xf] (!%p176_p12)  ;;  %v217_v8 = vld [vmem:[%s1238_s8] sm:$0xf] (!%p176_p12)  ;;  %395 = vperm.xlu0 (!%p176_p12), %1068, %v236_v10   ;;  %405 = vperm.xlu1 (!%p176_p12), %1069, %v238_v11   ;;  %v230_v16 = vld [vmem:[%s1444_s2 + $0x10] sm:$0xff] (!%p176_p12)  ;;  %vm619_vm9 = vcmask (!%p176_p12), 97280  }
  0x21   : > { %955 = vmatprep.subr.msk.mxu0 (!%p176_p12), %vm273_vm0, %v218_v7  ;;  %1002 = vmatprep.subr.msk.mxu1 (!%p176_p12), %vm273_vm0, %v218_v7  ;;  %v237_v14 = vld [vmem:[%s1444_s2 + $0x48] sm:$0xff] (!%p176_p12)  ;;  %v234_v17 = vld [vmem:[%s1444_s2 + $0x30] sm:$0xff] (!%p176_p12)  ;;  %v231_v20 = vld [vmem:[%s1444_s2 + $0x18] sm:$0xff] (!%p176_p12)  ;;  %s953_s30 = sshll.u32 (!%p176_p12), %s1229_s4, 1  ;;  %s979_s5 = sshll.u32 (!%p176_p12), %s1192_s16, 5 }
  0x22   : > { %956 = vmatpush1.msk.msra.mxu0 (!%p176_p12), %vm273_vm0, %v217_v8  ;;  %1003 = vmatpush1.msk.msra.mxu1 (!%p176_p12), %vm273_vm0, %v217_v8  ;;  %v241_v18 = vld [vmem:[%s1444_s2 + $0x68] sm:$0xff] (!%p176_p12)  ;;  %v235_v21 = vld [vmem:[%s1444_s2 + $0x38] sm:$0xff] (!%p176_p12)  ;;  %v240_v2 = vld [vmem:[%s1444_s2 + $0x60] sm:$0xff] (!%p176_p12)  ;;  %s209_s6 = scalar_lea.vmem (!%p176_p12), [#allocation3], %s953_s30 }
  0x23   : > { %957 = vmatmul.mubr.msk.f32.vlgmr.msra.gmra.mrb[0].mxu0 (!%p176_p12), %vm248_vm1, %v228_v5  ;;  %961 = vmatmul.mubr.msk.f32.vlgmr.msra.gmra.mrb[0].mxu1 (!%p176_p12), %vm248_vm1, %v232_v9  ;;  %v247_v25 = vld [vmem:[%s1444_s2 + $0x98] sm:$0xf] (!%p176_p12)  ;;  %vm989_vm8 = vmpackc.low (!%p176_p12), %vm273_vm0, %vm1148_vm7  ;;  %s868_s7 = sshll.u32 (!%p176_p12), %s209_s6, 4  ;;  %s1400_s7 = int_to_ptr.vmem [resolvable:$true] %s868_s7 }
  0x24   : > { %350 = vmatprep.mubr.f32.mxu0 (!%p176_p12), %v1146_v4  ;;  %374 = vmatprep.mubr.f32.mxu1 (!%p176_p12), %v1146_v4  ;;  %s1082_s17 = scalar_lea.vmem (!%p176_p12), %s1400_s7, 32 }
  0x25   : > { %s212_s11 = scalar_select %p211_p13, %s1192_s16, 1  ;;  %400 = vperm.xlu0 %1068, %v237_v14   ;;  %410 = vperm.xlu1 %1069, %v239_v15  }
  0x26   : > { %p1083_p0 = scmp.ne.s32.totalorder %s1400_s7, %s1082_s17  ;;  %s1150_s16 = smov [#allocation3]  }
  0x27   : > { %s1020_s25 = smul.u32 40, %s212_s11  ;;  %958 = vmatmul.mubr.msk.f32.gmra.mrb[2].mxu0 %vm248_vm1, %v229_v12  ;;  %962 = vmatmul.mubr.msk.f32.gmra.mrb[2].mxu1 %vm248_vm1, %v233_v13  ;;  %s1086_s19 = sshll.u32 %s1150_s16, 4  ;;  %s1087_s19 = int_to_ptr.vmem [resolvable:$false] %s1086_s19 }
  0x28   : > { %356 = vmatprep.mubr.f32.mxu0 %v1146_v4  ;;  %380 = vmatprep.mubr.f32.mxu1 %v1146_v4  ;;  %p1084_p1 = pnand %p1083_p0, %p1210_p6  ;;  %s1088_s20 = scalar_lea.vmem %s1087_s19, 64 }
  0x29   : > { %s1277_s11 = scalar_lea.vmem %s1443_s1, %s1020_s25  ;;  %459 = vperm.xlu0 %1068, %v241_v18   ;;  %p1089_p3 = scmp.lt.s32.totalorder %s1400_s7, %s1087_s19 }
  0x2a   : > { %v223_v19 = vld [vmem:[%s1277_s11] sm:$0xff]  ;;  %v224_v22 = vld [vmem:[%s1277_s11 + $0x8] sm:$0xff]  ;;  %v225_v23 = vld [vmem:[%s1277_s11 + $0x10] sm:$0xff]  ;;  %p1085_p2 = pneg %p1084_p1  ;;  %p1090_p4 = scmp.lt.s32.totalorder %s1088_s20, %s1082_s17 }
  0x2b   : > { %959 = vmatmul.mubr.msk.f32.gmra.mrb[4].mxu0 %vm248_vm1, %v230_v16  ;;  %963 = vmatmul.mubr.msk.f32.gmra.mrb[4].mxu1 %vm248_vm1, %v234_v17  ;;  %v226_v24 = vld [vmem:[%s1277_s11 + $0x18] sm:$0xff]  ;;  %v227_v3 = vld [vmem:[%s1277_s11 + $0x20] sm:$0x3] }
  0x2c   : > { %362 = vmatprep.mubr.f32.mxu0 %v1146_v4  ;;  %386 = vmatprep.mubr.f32.mxu1 %v1146_v4  ;;  %1021 = vpush %v227_v3  ;;  %v593_v5 = vrot.slane %v227_v3, 1  ;;  %p1091_p5 = por %p1090_p4, %p1089_p3 }
  0x2d   : > { %431 = vperm.xlu1 %1069, %v223_v19   ;;  %436 = vperm.xlu0 %1068, %v224_v22  }
  0x2e   : > { %1023 = vpush %v593_v5  ;;  %p1092_p7 = pnand %p1091_p5, %p1085_p2 }
  0x2f   : > { %960 = vmatmul.mubr.msk.f32.gmra.mrb[6].mxu0 %vm248_vm1, %v231_v20  ;;  %964 = vmatmul.mubr.msk.f32.gmra.mrb[6].mxu1 %vm248_vm1, %v235_v21 }
  0x30   : > { %530 = vmatprep.mubr.f32.mxu1 %v1146_v4  ;;  %700 = vmatprep.mubr.f32.mxu0 %v1146_v4 }
  0x31   : > { %441 = vperm.xlu1 %1069, %v225_v23   ;;  %446 = vperm.xlu0 %1068, %v226_v24  }
  0x35   : > { %735 = vperm.xlu1 %1069, %v247_v25  }
  0x5d   : > { %s1022_s10 = spop %1021 }
  0x5f   : > { %s1024_s11 = spop %1023 }
  0x9f   : > { %v396_v26 = vpop.permute.xlu0 %395  ;;  %v406_v31 = vpop.permute.xlu1 %405 }
  0xa4   : > { %v401_v32 = vpop.permute.xlu0 %400  ;;  %v411_v51 = vpop.permute.xlu1 %410 }
  0xa8   : > { %v460_v6 = vpop.permute.xlu0 %459 }
  0xf6   : > { %v346_v27 = vpop.f32.mrb[0].mxu0  ;;  %v1311_v28 = vpop.f32.mrb[0].mxu1 }
  0xf7   : > { %v348_v29 = vpop.f32.mrb[1].mxu0  ;;  %v1313_v30 = vpop.f32.mrb[1].mxu1  ;;  %v413_v33 = vadd.f32 %v396_v26, %v346_v27 }
  0xf8   : > { %v414_v34 = vadd.f32 %v396_v26, %v348_v29 }
  0xf9   : > { %v421_v41 = vmax.f32 %v413_v33, 0.0 }
  0xfa   : > { %v352_v35 = vpop.f32.mrb[2].mxu0  ;;  %v1315_v36 = vpop.f32.mrb[2].mxu1  ;;  %v422_v43 = vmax.f32 %v414_v34, 0.0 }
  0xfb   : > { %v415_v37 = vadd.f32 %v401_v32, %v352_v35  ;;  %v354_v38 = vpop.f32.mrb[3].mxu0  ;;  %v1317_v39 = vpop.f32.mrb[3].mxu1 }
  0xfc   : > { %v416_v40 = vadd.f32 %v401_v32, %v354_v38 }
  0xfd   : > { %v423_v42 = vmax.f32 %v415_v37, 0.0 }
  0xfe   : > { %v424_v44 = vmax.f32 %v416_v40, 0.0  ;;  %v358_v45 = vpop.f32.mrb[4].mxu0  ;;  %v1319_v46 = vpop.f32.mrb[4].mxu1 }
  0xff   : > { %v982_v47 = vpack.c.bf16 %v423_v42, %v421_v41  ;;  %v360_v48 = vpop.f32.mrb[5].mxu0  ;;  %v1321_v49 = vpop.f32.mrb[5].mxu1  ;;  %v417_v52 = vadd.f32 %v406_v31, %v358_v45 }
 0x100   : > { %v980_v50 = vpack.c.bf16 %v424_v44, %v422_v43  ;;  %v418_v53 = vadd.f32 %v406_v31, %v360_v48  ;;  %v1348_v48 = vld [vmem:[%s1238_s8 + $0x10] sm:$0xf] }
 0x101   : > { %v425_v60 = vmax.f32 %v417_v52, 0.0  ;;  %v1352_v52 = vld [vmem:[%s1238_s8 + $0x18] sm:$0xf] }
 0x102   : > { %v364_v54 = vpop.f32.mrb[6].mxu0  ;;  %v1323_v55 = vpop.f32.mrb[6].mxu1  ;;  %981 = vmatprep.subr.bf16.mxu1 %v980_v50  ;;  %v426_v62 = vmax.f32 %v418_v53, 0.0  ;;  %v595_v50 = vstv %s1024_s11  ;;  %v219_v53 = vld [vmem:[%s1238_s8] sm:$0xf0]  ;;  %s1398_s11 = scalar_lea.hbm %s1445_s3, %s979_s5 }
 0x103   : > { %v419_v56 = vadd.f32 %v411_v51, %v364_v54  ;;  %v366_v57 = vpop.f32.mrb[7].mxu0  ;;  %v1325_v58 = vpop.f32.mrb[7].mxu1  ;;  %983 = vmatpush1.bf16.msra.mxu1 %v982_v47 }
 0x104   : > { %v420_v59 = vadd.f32 %v411_v51, %v366_v57  ;;  %v597_v57 = vmul.f32 %v595_v50, %v1348_v48 }
 0x105   : > { %v427_v61 = vmax.f32 %v419_v56, 0.0  ;;  %v220_v56 = vld [vmem:[%s1238_s8 + $0x8] sm:$0xf0]  ;;  %s854_s8 = scalar_lea.sflag [#allocation4], %s1229_s4 }
 0x106   : > { %v428_v63 = vmax.f32 %v420_v59, 0.0  ;;  %v598_v59 = vmul.f32 %v595_v50, %v1352_v52 }
 0x107   : > { %v986_v0 = vpack.c.bf16 %v427_v61, %v425_v60 }
 0x108   : > { %v984_v1 = vpack.c.bf16 %v428_v63, %v426_v62  ;;  %v589_v63 = vstv %s1022_s10  ;;  %v602_v5 = vrot.slane %v598_v59, 4 }
 0x10a   : > { %985 = vmatprep.subr.bf16.mxu1 %v984_v1 }
 0x10b   : > { %987 = vmatpush1.bf16.msra.mxu1 %v986_v0 }
 0x10e   : > { %965 = vmatmul.mubr.msk.f32.vlgmr.msra.gmra.mrb[8].mxu1 %vm462_vm2, %v240_v2  ;;  %v601_v2 = vrot.slane %v597_v57, 4 }
 0x10f   : > { %805 = vmatprep.mubr.f32.mxu1 %v1146_v4 }
 0x1e1   : > { %v532_v7 = vpop.f32.mrb[8].mxu1 }
 0x1e2   : > { %v1333_v8 = vadd.f32 %v532_v7, %v460_v6  ;;  %v534_v9 = vpop.f32.mrb[9].mxu1 }
 0x1e3   : > { %v1335_v10 = vadd.f32 %v534_v9, %v460_v6 }
 0x1e4   : > { %v543_v11 = vand.u32 2147483647, %v1333_v8  ;;  %v537_v33 = vmax.f32 %v1333_v8, 0.0  ;;  %vm539_vm5 = vcmp.ne.f32.partialorder %v1333_v8, %v1333_v8  ;;  %v579_v51 = vrot.slane %v1333_v8, 4 }
 0x1e5   : > { %v544_v12 = vand.u32 2147483647, %v1335_v10  ;;  %v538_v38 = vmax.f32 %v1335_v10, 0.0  ;;  %vm540_vm6 = vcmp.ne.f32.partialorder %v1335_v10, %v1335_v10  ;;  %v580_v54 = vrot.slane %v1335_v10, 4 }
 0x1e6   : > { %v545_v13 = vsub.f32 0.0, %v543_v11  ;;  %v583_v60 = vsub.f32 %v219_v53, %v579_v51 }
 0x1e7   : > { %v546_v14 = vsub.f32 0.0, %v544_v12  ;;  %v584_v62 = vsub.f32 %v220_v56, %v580_v54 }
 0x1e8   : > { %v547_v15 = vmul.f32 1.442695, %v545_v13 }
 0x1e9   : > { %v549_v16 = vmul.f32 1.442695, %v546_v14 }
 0x1ea   : > { %1070 = vpow2.f32 %v547_v15 }
 0x1eb   : > { %1072 = vpow2.f32 %v549_v16 }
 0x1f4   : > { %v1071_v17 = vpop.eup %1070 }
 0x1f5   : > { %v1073_v18 = vpop.eup %1072  ;;  %v551_v19 = vadd.f32 1.0, %v1071_v17  ;;  %v554_v21 = vmul.f32 -0.5, %v1071_v17  ;;  %v557_v24 = vand.u32 2147483647, %v1071_v17 }
 0x1f6   : > { %v560_v20 = vadd.f32 1.0, %v1073_v18  ;;  %v563_v22 = vmul.f32 -0.5, %v1073_v18  ;;  %v566_v26 = vand.u32 2147483647, %v1073_v18 }
 0x1f7   : > { %1074 = vlog2.f32 %v551_v19  ;;  %v555_v23 = vadd.f32 1.0, %v554_v21  ;;  %vm558_vm3 = vcmp.lt.f32.partialorder %v557_v24, 0.0004427343  ;;  %v243_v19 = vld [vmem:[%s1444_s2 + $0x78] sm:$0xff]  ;;  %v245_v21 = vld [vmem:[%s1444_s2 + $0x88] sm:$0xff] }
 0x1f8   : > { %1076 = vlog2.f32 %v560_v20  ;;  %v564_v25 = vadd.f32 1.0, %v563_v22  ;;  %vm567_vm4 = vcmp.lt.f32.partialorder %v566_v26, 0.0004427343  ;;  %v244_v20 = vld [vmem:[%s1444_s2 + $0x80] sm:$0xff]  ;;  %v432_v22 = vpop.permute.xlu1 %431 }
 0x1f9   : > { %v556_v32 = vmul.f32 %v1071_v17, %v555_v23  ;;  %v449_v23 = vadd.f32 %v432_v22, %v1311_v28  ;;  %v450_v24 = vadd.f32 %v432_v22, %v1313_v30 }
 0x1fa   : > { %v565_v35 = vmul.f32 %v1073_v18, %v564_v25  ;;  %v242_v18 = vld [vmem:[%s1444_s2 + $0x70] sm:$0xff] }
 0x201   : > { %v1075_v27 = vpop.eup %1074 }
 0x202   : > { %v1077_v29 = vpop.eup %1076  ;;  %v553_v31 = vmul.f32 0.6931472, %v1075_v27 }
 0x203   : > { %v562_v34 = vmul.f32 0.6931472, %v1077_v29  ;;  %v437_v29 = vpop.permute.xlu0 %436 }
 0x204   : > { %v559_v37 = vsel %vm558_vm3, %v556_v32, %v553_v31  ;;  %v451_v32 = vadd.f32 %v437_v29, %v1315_v36 }
 0x205   : > { %v569_v40 = vadd.f32 %v559_v37, %v537_v33  ;;  %v568_v41 = vsel %vm567_vm4, %v565_v35, %v562_v34  ;;  %v452_v33 = vadd.f32 %v437_v29, %v1317_v39  ;;  %v442_v37 = vpop.permute.xlu1 %441 }
 0x206   : > { %v570_v42 = vadd.f32 %v568_v41, %v538_v38  ;;  %v454_v30 = vadd.f32 %v442_v37, %v1321_v49 }
 0x207   : > { %v571_v43 = vsel %vm539_vm5, %v1333_v8, %v569_v40  ;;  %v453_v40 = vadd.f32 %v442_v37, %v1319_v46  ;;  %v447_v36 = vpop.permute.xlu0 %446 }
 0x208   : > { %v573_v44 = vadd.f32 0.001, %v571_v43  ;;  %v572_v45 = vsel %vm540_vm6, %v1335_v10, %v570_v42  ;;  %v455_v53 = vadd.f32 %v447_v36, %v1323_v55  ;;  %v246_v55 = vld [vmem:[%s1444_s2 + $0x90] sm:$0xf] }
 0x209   : > { %v574_v47 = vadd.f32 0.001, %v572_v45 }
 0x20a   : > { %1078 = vrcp.f32 %v573_v44  ;;  %v615_v14 = vrot.slane %v573_v44, 4 }
 0x20b   : > { %1080 = vrcp.f32 %v574_v47  ;;  %v616_v13 = vrot.slane %v574_v47, 4 }
 0x214   : > { %v1079_v61 = vpop.eup %1078 }
 0x215   : > { %v1081_v0 = vpop.eup %1080  ;;  %v585_v1 = vmul.f32 %v1079_v61, %v583_v60 }
 0x216   : > { %v586_v3 = vmul.f32 %v1081_v0, %v584_v62 }
 0x217   : > { %v591_v6 = vmul.f32 %v589_v63, %v585_v1 }
 0x218   : > { %v592_v7 = vmul.f32 %v589_v63, %v586_v3 }
 0x219   : > { %v605_v8 = vadd.f32 %v601_v2, %v591_v6 }
 0x21a   : > { %v606_v9 = vadd.f32 %v602_v5, %v592_v7 }
 0x21b   : > { %v609_v11 = vrot.slane %v605_v8, 4 }
 0x21c   : > { %v610_v10 = vrot.slane %v606_v9, 4 }
 0x21d   : > { %v617_v12 = vsel %vm273_vm0, %v609_v11, %v579_v51 }
 0x21e   : > { %v618_v15 = vsel %vm273_vm0, %v610_v10, %v580_v54  ;;  %v991_v17 = vpack.c.bf16 %v615_v14, %v617_v12  ;;  %v456_v54 = vadd.f32 %v447_v36, %v1325_v58  ;;  %v736_v58 = vpop.permute.xlu1 %735 }
 0x21f   : > { %v988_v16 = vpack.c.bf16 %v616_v13, %v618_v15 }
 0x221   : > { %990 = vmatprep.subr.msk.bf16.mxu0 %vm989_vm8, %v988_v16  ;;  %v1149_v16 = vmov 1966171168  }
 0x222   : > { %993 = vmatpush1.bf16.msk.msra.mxu0 %vm989_vm8, %v991_v17  ;;  %v834_v17 = vunpack.c.l.s4 %v1149_v16 }
 0x225   : > { %968 = vmatmul.mubr.msk.f32.vlgmr.msra.gmra.mrb[8].mxu0 %vm619_vm9, %v242_v18  ;;  %v836_v18 = vlaneseq }
 0x226   : > { %706 = vmatprep.mubr.f32.mxu0 %v1146_v4 }
 0x227   : > { %v837_v22 = vshrl.u32 %v836_v18, 7  ;;  %vm850_vm10 = vcmp.lt.s32.totalorder %v836_v18, 256 }
 0x229   : > { %969 = vmatmul.mubr.msk.f32.gmra.mrb[10].mxu0 %vm619_vm9, %v243_v19 }
 0x22a   : > { %712 = vmatprep.mubr.f32.mxu0 %v1146_v4 }
 0x22d   : > { %970 = vmatmul.mubr.msk.f32.gmra.mrb[12].mxu0 %vm619_vm9, %v244_v20 }
 0x22e   : > { %718 = vmatprep.mubr.f32.mxu0 %v1146_v4 }
 0x231   : > { %971 = vmatmul.mubr.msk.f32.gmra.mrb[14].mxu0 %vm619_vm9, %v245_v21 }
 0x2f8   : > { %v702_v25 = vpop.f32.mrb[8].mxu0 }
 0x2f9   : > { %v703_v26 = vadd.f32 %v702_v25, %v449_v23  ;;  %v704_v27 = vpop.f32.mrb[9].mxu0 }
 0x2fa   : > { %v705_v31 = vadd.f32 %v704_v27, %v450_v24 }
 0x2fb   : > { %v725_v41 = vmax.f32 %v703_v26, 0.0 }
 0x2fc   : > { %v708_v4 = vpop.f32.mrb[10].mxu0  ;;  %v726_v42 = vmax.f32 %v705_v31, 0.0 }
 0x2fd   : > { %v709_v34 = vadd.f32 %v708_v4, %v451_v32  ;;  %v710_v35 = vpop.f32.mrb[11].mxu0 }
 0x2fe   : > { %v711_v38 = vadd.f32 %v710_v35, %v452_v33 }
 0x2ff   : > { %v727_v28 = vmax.f32 %v709_v34, 0.0 }
 0x300   : > { %v728_v43 = vmax.f32 %v711_v38, 0.0  ;;  %v714_v44 = vpop.f32.mrb[12].mxu0 }
 0x301   : > { %v996_v45 = vpack.c.bf16 %v727_v28, %v725_v41  ;;  %v715_v47 = vadd.f32 %v714_v44, %v453_v40  ;;  %v716_v50 = vpop.f32.mrb[13].mxu0 }
 0x302   : > { %v994_v51 = vpack.c.bf16 %v728_v43, %v726_v42  ;;  %v717_v39 = vadd.f32 %v716_v50, %v454_v30 }
 0x303   : > { %v729_v49 = vmax.f32 %v715_v47, 0.0 }
 0x304   : > { %v720_v56 = vpop.f32.mrb[14].mxu0  ;;  %995 = vmatprep.subr.bf16.mxu1 %v994_v51  ;;  %v730_v61 = vmax.f32 %v717_v39, 0.0 }
 0x305   : > { %v721_v46 = vadd.f32 %v720_v56, %v455_v53  ;;  %v722_v57 = vpop.f32.mrb[15].mxu0  ;;  %997 = vmatpush1.bf16.msra.mxu1 %v996_v45 }
 0x306   : > { %v723_v59 = vadd.f32 %v722_v57, %v456_v54 }
 0x307   : > { %v731_v60 = vmax.f32 %v721_v46, 0.0 }
 0x308   : > { %v732_v62 = vmax.f32 %v723_v59, 0.0 }
 0x309   : > { %v1000_v63 = vpack.c.bf16 %v731_v60, %v729_v49 }
 0x30a   : > { %v998_v0 = vpack.c.bf16 %v732_v62, %v730_v61 }
 0x30c   : > { %999 = vmatprep.subr.bf16.mxu1 %v998_v0 }
 0x30d   : > { %1001 = vmatpush1.bf16.msra.mxu1 %v1000_v63 }
 0x310   : > { %972 = vmatmul.mubr.msk.f32.vlgmr.msra.gmra.mrb[10].mxu1 %vm462_vm2, %v246_v55 }
 0x3e3   : > { %v807_v1 = vpop.f32.mrb[10].mxu1 }
 0x3e4   : > { %v808_v2 = vadd.f32 %v807_v1, %v736_v58  ;;  %v809_v3 = vpop.f32.mrb[11].mxu1 }
 0x3e5   : > { %v810_v5 = vadd.f32 %v809_v3, %v736_v58 }
 0x3e6   : > { %v812_v6 = vsub.f32 %v808_v2, %v1348_v48 }
 0x3e7   : > { %v813_v7 = vsub.f32 %v810_v5, %v1352_v52  ;;  %v835_v52 = vunpack.c.0.s8 %v834_v17 }
 0x3e8   : > { %v814_v8 = vmul.f32 %v812_v6, %v812_v6 }
 0x3e9   : > { %v815_v9 = vmul.f32 %v813_v7, %v813_v7  ;;  %v838_v27 = vsub.s32 %v835_v52, %v837_v22 }
 0x3ea   : > { %v816_v11 = vsel %vm273_vm0, %v814_v8, 0.0 }
 0x3eb   : > { %v817_v10 = vrot.slane %v816_v11, 4  ;;  %v823_v12 = vsel %vm273_vm0, %v815_v9, 0.0 }
 0x3ec   : > { %v824_v13 = vrot.slane %v823_v12, 4 }
 0x3ed   : > { %v818_v14 = vadd.f32 %v817_v10, %v816_v11 }
 0x3ee   : > { %v825_v15 = vadd.f32 %v824_v13, %v823_v12 }
 0x3ef   : > { %v819_v19 = vrot.slane %v818_v14, 2 }
 0x3f0   : > { %v826_v20 = vrot.slane %v825_v15, 2 }
 0x3f1   : > { %v820_v48 = vadd.f32 %v819_v19, %v818_v14 }
 0x3f2   : > { %v827_v21 = vadd.f32 %v826_v20, %v825_v15 }
 0x3f3   : > { %v821_v23 = vrot.slane %v820_v48, 1 }
 0x3f4   : > { %v828_v24 = vrot.slane %v827_v21, 1 }
 0x3f5   : > { %v822_v25 = vadd.f32 %v821_v23, %v820_v48 }
 0x3f6   : > { %v829_v26 = vadd.f32 %v828_v24, %v827_v21 }
 0x3f8   : > { %v832_v29 = vcombine.low %v822_v25, %v829_v26 }
 0x3fa   : > { %v839_v31 = vrot.slane %v832_v29, %v838_v27 }
 0x3fc   : > { %v846_v32 = vrot.slane %v839_v31, %v838_v27 }
 0x3fe   : > { %852 = vst.msk [vmem:[%s209_s6] sm:$0x3] %vm850_vm10, %v846_v32 }
 0x3ff   : > { %1095 = shalt.err (!%p1092_p7)
}
 0x400   : > { %s1096_s4 = scalar_lea.hbm %s1398_s11, 32  ;;  %s1100_s25 = scalar_lea.hbm %s1445_s3, 64 }
 0x401   : > { %p1097_p10 = scmp.ne.s32.totalorder %s1398_s11, %s1096_s4  ;;  %p1101_p13 = scmp.lt.u32.totalorder %s1398_s11, %s1445_s3 }
 0x402   : > { %p1102_p0 = scmp.lt.u32.totalorder %s1100_s25, %s1096_s4  ;;  %p1104_p2 = scmp.lt.u32.totalorder %s1096_s4, %s1398_s11 }
 0x403   : > { %p1098_p11 = pnand %p1097_p10, %p1210_p6 }
 0x404   : > { %p1103_p1 = por %p1102_p0, %p1101_p13 }
 0x405   : > { %p1099_p12 = pneg %p1098_p11 }
 0x406   : > { %p1105_p3 = por %p1104_p2, %p1103_p1 }
 0x408   : > { %p1106_p4 = pnand %p1105_p3, %p1099_p12 }
 0x40a   : > { %1109 = shalt.err (!%p1106_p4)
}
 0x40b   : > { %1025 = dma.vmem_to_hbm [thread:$0]  (%p1210_p6), %s1400_s7, 32, %s1398_s11, %s854_s8  }
 0x40c PF: > { %s880_s29 = sand.u32 1, %s1132_s12   ;;  %p1028_p5 = pnand %p947_p9, %p1214_p8 }
 0x40d   : > { %s881_s30 = scalar_lea.sflag [#allocation4], %s880_s29 }
 0x40e   : > { %1127 = dma.done.wait (!%p1028_p5), %s881_s30, 32  }
 0x40f   : > { %1129 = vsyncadd (!%p1028_p5), %s881_s30, 4294967264  ;;  %p13_p7 = scmp.ge.s32.totalorder %s1196_s18, 4   ;;  %s1448_s12 = smov %s1136_s13 }
 0x410   : > { %s1449_s13 = smov %s1140_s14  ;;  %s1450_s14 = smov %s1208_s21 }
 0x411   : > { %s1451_s15 = smov %s1196_s18  ;;  %15 = sbr.rel (!%p13_p7) target bundleno = 3 (0x3), region = 98 }
 0x418   :  { %886 = vsyncpa [#allocation4], 1 }
 0x419   :  { %888 = vsyncpa [#allocation4 + $0x1], 1 }

</bundles_post_ra>
